<compile_context>
chip_gen: v7x
topology: tpu7x:2x2x1
jax: 0.10.0
libtpu: 0.0.40
codegen_flags: <defaults>
</compile_context>

<pallas_src>
import functools

import jax
import jax.numpy as jnp
from jax import lax
from jax.experimental import pallas as pl
from jax.experimental.pallas import tpu as pltpu

IN_FEATURES = 768
NUM_LABELS = 5
N_PAD = 128          # lane-dense padded output width
P_DROP = 0.3


def _round_up(x, m):
    return ((x + m - 1) // m) * m


def _classifier_kernel(seed_ref, x_ref, w_ref, b_ref, o_ref, *, training: bool, tile_b: int):
    # seed_ref: SMEM (1,) int32 (scalar prefetch)
    # x_ref:    VMEM [tile_b, 768] f32          w_ref: VMEM [768, 128] f32 (W^T, zero-padded)
    # b_ref:    VMEM [1, 128] f32               o_ref: VMEM [tile_b, 128] f32
    x = x_ref[...]

    if training:
        # Stateless counter-based hash RNG: bits depend only on (seed, global element index),
        # so the dropout mask is identical regardless of tiling / grid order and needs no
        # TPU-only PRNG primitives.
        rows = lax.broadcasted_iota(jnp.int32, x.shape, 0).astype(jnp.uint32)
        cols = lax.broadcasted_iota(jnp.int32, x.shape, 1).astype(jnp.uint32)
        row_off = (pl.program_id(0) * tile_b).astype(jnp.uint32)
        idx = (rows + row_off) * jnp.uint32(IN_FEATURES) + cols
        seed = seed_ref[0].astype(jnp.uint32)
        h = idx ^ (seed * jnp.uint32(0x9E3779B9))
        h = (h ^ (h >> 16)) * jnp.uint32(0x7FEB352D)   # splitmix32-style mixer
        h = (h ^ (h >> 15)) * jnp.uint32(0x846CA68B)
        h = h ^ (h >> 16)
        # Keep with probability (1 - P_DROP): compare raw uint32 bits against threshold.
        keep = h >= jnp.uint32(int(P_DROP * (1 << 32)))
        x = jnp.where(keep, x * jnp.float32(1.0 / (1.0 - P_DROP)), jnp.float32(0.0))

    y = jnp.dot(x, w_ref[...], preferred_element_type=jnp.float32)
    o_ref[...] = y + b_ref[...]


def regularized_classifier(x, weight, bias, seed, *, training=True):
    """x: [B, 768]; weight: [num_labels, 768] (PyTorch layout); bias: [num_labels];
    seed: int. Returns [B, num_labels] f32 (forward of RegularizedClassifier)."""
    B, F = x.shape
    assert F == IN_FEATURES
    num_labels = weight.shape[0]
    assert num_labels <= N_PAD

    # Lane-dense padding of the output/N dimension (num_labels -> 128).
    w_pad = jnp.zeros((IN_FEATURES, N_PAD), jnp.float32).at[:, :num_labels].set(
        weight.T.astype(jnp.float32))
    b_pad = jnp.zeros((1, N_PAD), jnp.float32).at[:, :num_labels].set(
        bias.astype(jnp.float32))

    # Batch tiling: pipeline-friendly tiles; pad the batch so the grid divides evenly.
    tile_b = min(512, _round_up(B, 8))
    b_rows = _round_up(B, tile_b)
    x_f32 = x.astype(jnp.float32)
    if b_rows != B:
        x_f32 = jnp.pad(x_f32, ((0, b_rows - B), (0, 0)))

    seed_arr = jnp.asarray([seed], dtype=jnp.int32)
    kernel = functools.partial(_classifier_kernel, training=training, tile_b=tile_b)

    out = pl.pallas_call(
        kernel,
        out_shape=jax.ShapeDtypeStruct((b_rows, N_PAD), jnp.float32),
        grid_spec=pltpu.PrefetchScalarGridSpec(
            num_scalar_prefetch=1,                       # seed -> SMEM
            grid=(b_rows // tile_b,),
            in_specs=[
                pl.BlockSpec((tile_b, IN_FEATURES), lambda i, _s: (i, 0)),  # x: streamed
                pl.BlockSpec((IN_FEATURES, N_PAD), lambda i, _s: (0, 0)),   # W^T: resident
                pl.BlockSpec((1, N_PAD), lambda i, _s: (0, 0)),             # bias: resident
            ],
            out_specs=pl.BlockSpec((tile_b, N_PAD), lambda i, _s: (i, 0)),
        ),
        compiler_params=pltpu.CompilerParams(
            dimension_semantics=("parallel",),           # batch tiles independent (v7x 2 TCs)
        ),
    )(seed_arr, x_f32, w_pad, b_pad)

    return out[:B, :num_labels]


if __name__ == "__main__":
    key = jax.random.PRNGKey(0)
    kx, kw, kb = jax.random.split(key, 3)

    B = 8
    x = jax.random.normal(kx, (B, IN_FEATURES), dtype=jnp.float32)

    # Deterministic Linear(768, 5) init (uniform(-1/sqrt(768), 1/sqrt(768)), like nn.Linear).
    bound = 1.0 / (IN_FEATURES ** 0.5)
    weight = jax.random.uniform(kw, (NUM_LABELS, IN_FEATURES),
                                minval=-bound, maxval=bound, dtype=jnp.float32)
    bias = jax.random.uniform(kb, (NUM_LABELS,),
                              minval=-bound, maxval=bound, dtype=jnp.float32)

    # Training path: dropout applied inside the kernel.
    # TODO(synk): torch.nn.Dropout's exact RNG stream is not reproducible; keep-prob 0.7
    # semantics (Bernoulli mask, 1/(1-p) scaling) are preserved with an in-kernel hash RNG.
    out_train = regularized_classifier(x, weight, bias, seed=1234, training=True)
    jax.block_until_ready(out_train)
    assert out_train.shape == (B, NUM_LABELS)
    assert bool(jnp.all(jnp.isfinite(out_train)))

    # Eval path: no dropout -> must match the plain Linear reference.
    out_eval = regularized_classifier(x, weight, bias, seed=0, training=False)
    jax.block_until_ready(out_eval)
    ref = x @ weight.T + bias
    assert out_eval.shape == (B, NUM_LABELS)
    assert jnp.allclose(out_eval, ref, atol=1e-4, rtol=1e-4)

    # Ragged batch (exercises the batch-padding path).
    out_small = regularized_classifier(x[:3], weight, bias, seed=0, training=False)
    jax.block_until_ready(out_small)
    assert jnp.allclose(out_small, ref[:3], atol=1e-4, rtol=1e-4)

    print("KERNEL_OK")
</pallas_src>

<mosaic_0001>
module attributes {stable_mosaic.version = 11 : i64} {
  func.func @_classifier_kernel(%arg0: i32, %arg1: memref<1xi32, #tpu.memory_space<smem>>, %arg2: memref<8x768xf32, #tpu.memory_space<vmem>>, %arg3: memref<768x128xf32, #tpu.memory_space<vmem>>, %arg4: memref<1x128xf32, #tpu.memory_space<vmem>>, %arg5: memref<8x128xf32, #tpu.memory_space<vmem>>) attributes {dimension_semantics = [#tpu.dimension_semantics<parallel>], iteration_bounds = array<i64: 1>, scalar_prefetch = 1 : i64, scratch_operands = 0 : i64, tpu.core_type = #tpu.core_type<tc>, window_params = [{transform_indices = @transform_0, window_bounds = array<i64: 8, 768>}, {pipeline_mode = #tpu.pipeline_mode<synchronous>, transform_indices = @transform_1, window_bounds = array<i64: 768, 128>}, {pipeline_mode = #tpu.pipeline_mode<synchronous>, transform_indices = @transform_2, window_bounds = array<i64: 1, 128>}, {transform_indices = @transform_3, window_bounds = array<i64: 8, 128>}]} {
    %c0 = arith.constant 0 : index
    %c0_0 = arith.constant 0 : index
    %0 = vector.load %arg2[%c0, %c0_0] : memref<8x768xf32, #tpu.memory_space<vmem>>, vector<8x768xf32>
    %1 = tpu.iota {dimensions = array<i32: 0>} : vector<8x768xi32>
    %2 = tpu.iota {dimensions = array<i32: 1>} : vector<8x768xi32>
    %c8_i32 = arith.constant 8 : i32
    %3 = arith.muli %arg0, %c8_i32 : i32
    %4 = vector.broadcast %3 : i32 to vector<8x768xi32>
    %5 = arith.addi %1, %4 : vector<8x768xi32>
    %c768_i32 = arith.constant 768 : i32
    %6 = vector.broadcast %c768_i32 : i32 to vector<8x768xi32>
    %7 = arith.muli %5, %6 : vector<8x768xi32>
    %8 = arith.addi %7, %2 : vector<8x768xi32>
    %c0_1 = arith.constant 0 : index
    %9 = memref.load %arg1[%c0_1] : memref<1xi32, #tpu.memory_space<smem>>
    %c-1640531527_i32 = arith.constant -1640531527 : i32
    %10 = arith.muli %9, %c-1640531527_i32 : i32
    %11 = vector.broadcast %10 : i32 to vector<8x768xi32>
    %12 = arith.xori %8, %11 : vector<8x768xi32>
    %c16_i32 = arith.constant 16 : i32
    %13 = vector.broadcast %c16_i32 : i32 to vector<8x768xi32>
    %14 = arith.shrui %12, %13 : vector<8x768xi32>
    %15 = arith.xori %12, %14 : vector<8x768xi32>
    %c2146121005_i32 = arith.constant 2146121005 : i32
    %16 = vector.broadcast %c2146121005_i32 : i32 to vector<8x768xi32>
    %17 = arith.muli %15, %16 : vector<8x768xi32>
    %c15_i32 = arith.constant 15 : i32
    %18 = vector.broadcast %c15_i32 : i32 to vector<8x768xi32>
    %19 = arith.shrui %17, %18 : vector<8x768xi32>
    %20 = arith.xori %17, %19 : vector<8x768xi32>
    %c-2073254261_i32 = arith.constant -2073254261 : i32
    %21 = vector.broadcast %c-2073254261_i32 : i32 to vector<8x768xi32>
    %22 = arith.muli %20, %21 : vector<8x768xi32>
    %c16_i32_2 = arith.constant 16 : i32
    %23 = vector.broadcast %c16_i32_2 : i32 to vector<8x768xi32>
    %24 = arith.shrui %22, %23 : vector<8x768xi32>
    %25 = arith.xori %22, %24 : vector<8x768xi32>
    %c1288490188_i32 = arith.constant 1288490188 : i32
    %26 = vector.broadcast %c1288490188_i32 : i32 to vector<8x768xi32>
    %27 = arith.cmpi uge, %25, %26 : vector<8x768xi32>
    %cst = arith.constant 1.42857146 : f32
    %28 = vector.broadcast %cst : f32 to vector<8x768xf32>
    %29 = arith.mulf %0, %28 : vector<8x768xf32>
    %cst_3 = arith.constant 0.000000e+00 : f32
    %30 = vector.broadcast %cst_3 : f32 to vector<8x768xf32>
    %31 = arith.select %27, %29, %30 : vector<8x768xi1>, vector<8x768xf32>
    %c0_4 = arith.constant 0 : index
    %c0_5 = arith.constant 0 : index
    %32 = vector.load %arg3[%c0_4, %c0_5] : memref<768x128xf32, #tpu.memory_space<vmem>>, vector<768x128xf32>
    %cst_6 = arith.constant dense<0.000000e+00> : vector<8x128xf32>
    %33 = tpu.matmul %31, %32, %cst_6 {dimension_numbers = #tpu.dot_dimension_numbers<[1], [0], [0], [1], [0, 0, 1, 1], [], []>} : vector<8x768xf32>, vector<768x128xf32>, vector<8x128xf32> -> vector<8x128xf32>
    %c0_7 = arith.constant 0 : index
    %c0_8 = arith.constant 0 : index
    %34 = vector.load %arg4[%c0_7, %c0_8] : memref<1x128xf32, #tpu.memory_space<vmem>>, vector<1x128xf32>
    %35 = vector.broadcast %34 : vector<1x128xf32> to vector<8x128xf32>
    %36 = arith.addf %33, %35 : vector<8x128xf32>
    %c0_9 = arith.constant 0 : index
    %c0_10 = arith.constant 0 : index
    %37 = vector.load %arg5[%c0_9, %c0_10] : memref<8x128xf32, #tpu.memory_space<vmem>>, vector<8x128xf32>
    tpu.vector_store %arg5[%c0_9, %c0_10], %36 {strides = array<i32>} : memref<8x128xf32, #tpu.memory_space<vmem>>, vector<8x128xf32>,
    return
  }
  func.func @transform_0(%arg0: i32, %arg1: memref<1xi32, #tpu.memory_space<smem>>) -> (i32, i32) {
    %c0_i32 = arith.constant 0 : i32
    %c0_i32_0 = arith.constant 0 : i32
    return %arg0, %c0_i32 : i32, i32
  }
  func.func @transform_1(%arg0: i32, %arg1: memref<1xi32, #tpu.memory_space<smem>>) -> (i32, i32) {
    %c0_i32 = arith.constant 0 : i32
    %c0_i32_0 = arith.constant 0 : i32
    %c0_i32_1 = arith.constant 0 : i32
    return %c0_i32, %c0_i32_0 : i32, i32
  }
  func.func @transform_2(%arg0: i32, %arg1: memref<1xi32, #tpu.memory_space<smem>>) -> (i32, i32) {
    %c0_i32 = arith.constant 0 : i32
    %c0_i32_0 = arith.constant 0 : i32
    %c0_i32_1 = arith.constant 0 : i32
    return %c0_i32, %c0_i32_0 : i32, i32
  }
  func.func @transform_3(%arg0: i32, %arg1: memref<1xi32, #tpu.memory_space<smem>>) -> (i32, i32) {
    %c0_i32 = arith.constant 0 : i32
    %c0_i32_0 = arith.constant 0 : i32
    return %arg0, %c0_i32 : i32, i32
  }
}

</mosaic_0001>

<bundles_post_ra>
// kernel: tpu_custom_call.1
= control target key start
LH: loop header
LB: loop body
LE: loop exit
PB: predicated region body
PF: predicated region fallthrough
CT: control target
= control target key end

     0   :  { %10 = vsyncpa [#allocation5], 0  ;;  %s878_s0 = inlined_call_operand.<no memory space> [shape: s32[1], index: 0, kind: input, shape index: {}]   ;;  %s879_s1 = inlined_call_operand.hbm [shape: f32[8,768], index: 1, kind: input, shape index: {}]   ;;  %s880_s2 = inlined_call_operand.hbm [shape: f32[768,128], index: 2, kind: input, shape index: {}]   ;;  %s881_s3 = inlined_call_operand.vmem [shape: f32[1,128], index: 3, kind: input, shape index: {}]   ;;  %s882_s4 = inlined_call_operand.hbm [shape: f32[8,128], index: 4, kind: output, shape index: {}]  }
   0x1   :  { %11 = vsyncpa [#allocation8], 0 }
   0x2   :  { %12 = vsyncpa [#allocation6], 0  ;;  %s758_s15 = smov [#allocation4]   ;;  %s759_s17 = smov [#allocation7]  }
   0x3   :  { %s19_s16 = sshll.u32 %s758_s15, 4  ;;  %s28_s18 = sshll.u32 %s759_s17, 4  ;;  %s20_s16 = int_to_ptr.vmem [resolvable:$true] %s19_s16  ;;  %s788_s18 = int_to_ptr.vmem [resolvable:$true] %s28_s18 }
   0x4   :  { %s686_s21 = scalar_lea.hbm %s879_s1, 768 }
   0x5   :  { %p687_p0 = scmp.ne.s32.totalorder %s879_s1, %s686_s21  ;;  %p690_p1 = scmp.lt.u32.totalorder %s686_s21, %s879_s1 }
   0x7   :  { %p692_p2 = pnand %p690_p1, %p687_p0 }
   0x9   :  { %695 = shalt.err (!%p692_p2)
}
   0xa   :  { %s696_s26 = scalar_lea.vmem %s20_s16, 768  ;;  %p701_p4 = scmp.lt.s32.totalorder %s20_s16, %s20_s16 }
   0xb   :  { %p697_p3 = scmp.ne.s32.totalorder %s20_s16, %s696_s26  ;;  %p702_p5 = scmp.lt.s32.totalorder %s696_s26, %s696_s26 }
   0xd   :  { %p703_p6 = por %p702_p5, %p701_p4 }
   0xf   :  { %p704_p7 = pnand %p703_p6, %p697_p3 }
  0x11   :  { %707 = shalt.err (!%p704_p7)
}
  0x12   :  { %22 = dma.hbm_to_vmem [thread:$0]  %s879_s1, 768, %s20_s16, [#allocation5]  }
  0x13   :  { %s708_s5 = scalar_lea.hbm %s880_s2, 12288 }
  0x14   :  { %p709_p8 = scmp.ne.s32.totalorder %s880_s2, %s708_s5  ;;  %p712_p9 = scmp.lt.u32.totalorder %s708_s5, %s880_s2 }
  0x16   :  { %p714_p10 = pnand %p712_p9, %p709_p8 }
  0x18   :  { %717 = shalt.err (!%p714_p10)
}
  0x19   :  { %s718_s10 = scalar_lea.vmem %s788_s18, 12288  ;;  %p723_p12 = scmp.lt.s32.totalorder %s788_s18, %s788_s18 }
  0x1a   :  { %p719_p11 = scmp.ne.s32.totalorder %s788_s18, %s718_s10  ;;  %p724_p13 = scmp.lt.s32.totalorder %s718_s10, %s718_s10 }
  0x1c   :  { %p725_p0 = por %p724_p13, %p723_p12 }
  0x1e   :  { %p726_p1 = pnand %p725_p0, %p719_p11 }
  0x20   :  { %729 = shalt.err (!%p726_p1)
}
  0x21   :  { %s760_s1 = smov 128   ;;  %s761_s11 = smov 8  }
  0x22   :  { %34 = dma.hbm_to_vmem [thread:$0]  %s880_s2, 12288, %s788_s18, [#allocation8], %s760_s1, %s760_s1, %s761_s11  }
  0x23   :  { %752 = dma.done.wait [#allocation5], 768  }
  0x24   :  { %753 = vsyncadd [#allocation5], 4294966528 }
  0x25   :  { %754 = dma.done.wait [#allocation8], 12288  }
  0x26   :  { %755 = vsyncadd [#allocation8], 4294955008  ;;  %v49_v0 = vlaneseq  ;;  %s69_s16 = smul.u32 2654435769, %s878_s0  ;;  %v159_v13 = vld [vmem:[#allocation7 + $0x80] sm:$0xff]  ;;  %v160_v14 = vld [vmem:[#allocation7 + $0x88] sm:$0xff] }
  0x27   :  { %v143_v15 = vld [vmem:[#allocation7] sm:$0xff]  ;;  %v585_v17 = vpack.c.bf16 %v160_v14, %v159_v13  ;;  %v144_v18 = vld [vmem:[#allocation7 + $0x8] sm:$0xff]  ;;  %v161_v28 = vld [vmem:[#allocation7 + $0x90] sm:$0xff]  ;;  %s762_s17 = smov [#allocation9]  }
  0x28   :  { %v50_v1 = vshrl.u32 %v49_v0, 7  ;;  %v822_v2 = vand.u32 127, %v49_v0  ;;  %v829_v7 = vstv %s69_s16  ;;  %v191_v19 = vld [vmem:[#allocation7 + $0x180] sm:$0xff]  ;;  %v192_v20 = vld [vmem:[#allocation7 + $0x188] sm:$0xff]  ;;  %v587_v24 = vpack.c.bf16 %v144_v18, %v143_v15  ;;  %v162_v32 = vld [vmem:[#allocation7 + $0x98] sm:$0xff]  ;;  %s463_s18 = sshll.u32 %s762_s17, 4  ;;  %s464_s18 = int_to_ptr.vmem [resolvable:$true] %s463_s18 }
  0x29   :  { %v617_v25 = vpack.c.bf16 %v192_v20, %v191_v19  ;;  %v175_v26 = vld [vmem:[#allocation7 + $0x100] sm:$0xff]  ;;  %v176_v27 = vld [vmem:[#allocation7 + $0x108] sm:$0xff]  ;;  %586 = vmatprep.subr.bf16.mxu0 %v585_v17  ;;  %v145_v33 = vld [vmem:[#allocation7 + $0x10] sm:$0xff]  ;;  %v589_v38 = vpack.c.bf16 %v162_v32, %v161_v28  ;;  %s730_s19 = scalar_lea.vmem %s464_s18, 128  ;;  %p735_p3 = scmp.lt.s32.totalorder %s464_s18, %s464_s18 }
  0x2a   :  { %v53_v3 = vadd.s32 128, %v822_v2  ;;  %v825_v4 = vmul.u32 768, %v50_v1  ;;  %v55_v5 = vadd.s32 384, %v822_v2  ;;  %v54_v6 = vadd.s32 256, %v822_v2  ;;  %v146_v34 = vld [vmem:[#allocation7 + $0x18] sm:$0xff]  ;;  %588 = vmatpush3.bf16.msra.mxu0 %v587_v24  ;;  %v193_v40 = vld [vmem:[#allocation7 + $0x190] sm:$0xff]  ;;  %p731_p2 = scmp.ne.s32.totalorder %s464_s18, %s730_s19  ;;  %p736_p4 = scmp.lt.s32.totalorder %s730_s19, %s730_s19 }
  0x2b   :  { %v57_v8 = vadd.s32 640, %v822_v2  ;;  %v619_v31 = vpack.c.bf16 %v176_v27, %v175_v26  ;;  %618 = vmatprep.subr.bf16.mxu1 %v617_v25  ;;  %v591_v39 = vpack.c.bf16 %v146_v34, %v145_v33  ;;  %v194_v41 = vld [vmem:[#allocation7 + $0x198] sm:$0xff]  ;;  %v177_v42 = vld [vmem:[#allocation7 + $0x110] sm:$0xff]  ;;  %v163_v47 = vld [vmem:[#allocation7 + $0xa0] sm:$0xff]  ;;  %590 = vmatprep.subr.bf16.mxu0 %v589_v38 }
  0x2c   :  { %v63_v9 = vadd.s32 %v825_v4, %v53_v3  ;;  %v62_v10 = vadd.s32 %v825_v4, %v822_v2  ;;  %v65_v11 = vadd.s32 %v825_v4, %v55_v5  ;;  %v64_v12 = vadd.s32 %v825_v4, %v54_v6  ;;  %v178_v46 = vld [vmem:[#allocation7 + $0x118] sm:$0xff]  ;;  %v164_v48 = vld [vmem:[#allocation7 + $0xa8] sm:$0xff]  ;;  %v147_v54 = vld [vmem:[#allocation7 + $0x20] sm:$0xff]  ;;  %p737_p5 = por %p736_p4, %p735_p3 }
  0x2d   :  { %v67_v16 = vadd.s32 %v825_v4, %v57_v8  ;;  %620 = vmatpush3.bf16.msra.mxu1 %v619_v31  ;;  %v621_v45 = vpack.c.bf16 %v194_v41, %v193_v40  ;;  %v623_v52 = vpack.c.bf16 %v178_v46, %v177_v42  ;;  %v593_v53 = vpack.c.bf16 %v164_v48, %v163_v47  ;;  %v148_v55 = vld [vmem:[#allocation7 + $0x28] sm:$0xff]  ;;  %v195_v56 = vld [vmem:[#allocation7 + $0x1a0] sm:$0xff]  ;;  %v165_v1 = vld [vmem:[#allocation7 + $0xb0] sm:$0xff] }
  0x2e   :  { %v72_v21 = vxor.u32 %v829_v7, %v63_v9  ;;  %v71_v22 = vxor.u32 %v829_v7, %v62_v10  ;;  %v74_v23 = vxor.u32 %v829_v7, %v65_v11  ;;  %v73_v29 = vxor.u32 %v829_v7, %v64_v12  ;;  %v196_v58 = vld [vmem:[#allocation7 + $0x1a8] sm:$0xff]  ;;  %v179_v59 = vld [vmem:[#allocation7 + $0x120] sm:$0xff]  ;;  %592 = vmatpush3.bf16.msra.mxu0 %v591_v39  ;;  %v166_v3 = vld [vmem:[#allocation7 + $0xb8] sm:$0xff]  ;;  %p738_p6 = pnand %p737_p5, %p731_p2 }
  0x2f   :  { %v76_v30 = vxor.u32 %v829_v7, %v67_v16  ;;  %622 = vmatprep.subr.bf16.mxu1 %v621_v45  ;;  %v180_v60 = vld [vmem:[#allocation7 + $0x128] sm:$0xff]  ;;  %v595_v63 = vpack.c.bf16 %v148_v55, %v147_v54  ;;  %v625_v0 = vpack.c.bf16 %v196_v58, %v195_v56  ;;  %v149_v5 = vld [vmem:[#allocation7 + $0x30] sm:$0xff]  ;;  %594 = vmatprep.subr.bf16.mxu0 %v593_v53  ;;  %v150_v10 = vld [vmem:[#allocation7 + $0x38] sm:$0xff] }
  0x30   :  { %v78_v35 = vshrl.u32 %v72_v21, 16  ;;  %v77_v36 = vshrl.u32 %v71_v22, 16  ;;  %v80_v37 = vshrl.u32 %v74_v23, 16  ;;  %v79_v43 = vshrl.u32 %v73_v29, 16  ;;  %v197_v11 = vld [vmem:[#allocation7 + $0x1b0] sm:$0xff]  ;;  %v198_v12 = vld [vmem:[#allocation7 + $0x1b8] sm:$0xff] }
  0x31   :  { %v82_v44 = vshrl.u32 %v76_v30, 16  ;;  %624 = vmatpush3.bf16.msra.mxu1 %v623_v52  ;;  %v627_v8 = vpack.c.bf16 %v180_v60, %v179_v59  ;;  %v597_v9 = vpack.c.bf16 %v166_v3, %v165_v1  ;;  %v629_v15 = vpack.c.bf16 %v198_v12, %v197_v11  ;;  %v181_v16 = vld [vmem:[#allocation7 + $0x130] sm:$0xff]  ;;  %v182_v17 = vld [vmem:[#allocation7 + $0x138] sm:$0xff]  ;;  %v167_v18 = vld [vmem:[#allocation7 + $0xc0] sm:$0xff] }
  0x32   :  { %v84_v49 = vxor.u32 %v78_v35, %v72_v21  ;;  %v843_v50 = vxor.u32 %v77_v36, %v71_v22  ;;  %v86_v51 = vxor.u32 %v80_v37, %v74_v23  ;;  %v85_v57 = vxor.u32 %v79_v43, %v73_v29  ;;  %626 = vmatprep.subr.bf16.mxu1 %v625_v0  ;;  %v168_v20 = vld [vmem:[#allocation7 + $0xc8] sm:$0xff]  ;;  %v199_v26 = vld [vmem:[#allocation7 + $0x1c0] sm:$0xff]  ;;  %v169_v38 = vld [vmem:[#allocation7 + $0xd0] sm:$0xff] }
  0x33   :  { %v845_v62 = vxor.u32 %v82_v44, %v76_v30  ;;  %596 = vmatpush3.bf16.msra.mxu0 %v595_v63  ;;  %v599_v25 = vpack.c.bf16 %v150_v10, %v149_v5  ;;  %v200_v27 = vld [vmem:[#allocation7 + $0x1c8] sm:$0xff]  ;;  %v631_v29 = vpack.c.bf16 %v182_v17, %v181_v16  ;;  %v601_v30 = vpack.c.bf16 %v168_v20, %v167_v18  ;;  %v151_v31 = vld [vmem:[#allocation7 + $0x40] sm:$0xff]  ;;  %v170_v39 = vld [vmem:[#allocation7 + $0xd8] sm:$0xff] }
  0x34   :  { %v90_v61 = vmul.u32 2146121005, %v84_v49  ;;  %v89_v6 = vmul.u32 2146121005, %v843_v50  ;;  %598 = vmatprep.subr.bf16.mxu0 %v597_v9  ;;  %v152_v32 = vld [vmem:[#allocation7 + $0x48] sm:$0xff]  ;;  %v183_v33 = vld [vmem:[#allocation7 + $0x140] sm:$0xff]  ;;  %v633_v36 = vpack.c.bf16 %v200_v27, %v199_v26  ;;  %v605_v49 = vpack.c.bf16 %v170_v39, %v169_v38 }
  0x35   :  { %v92_v14 = vmul.u32 2146121005, %v86_v51  ;;  %v91_v19 = vmul.u32 2146121005, %v85_v57  ;;  %628 = vmatpush3.bf16.msra.mxu1 %v627_v8  ;;  %v184_v37 = vld [vmem:[#allocation7 + $0x148] sm:$0xff]  ;;  %v201_v41 = vld [vmem:[#allocation7 + $0x1d0] sm:$0xff]  ;;  %v603_v46 = vpack.c.bf16 %v152_v32, %v151_v31 }
  0x36   :  { %v96_v13 = vshrl.u32 %v90_v61, 15  ;;  %v95_v22 = vshrl.u32 %v89_v6, 15  ;;  %v94_v24 = vmul.u32 2146121005, %v845_v62  ;;  %630 = vmatprep.subr.bf16.mxu1 %v629_v15  ;;  %v202_v42 = vld [vmem:[#allocation7 + $0x1d8] sm:$0xff]  ;;  %v635_v48 = vpack.c.bf16 %v184_v37, %v183_v33  ;;  %v153_v50 = vld [vmem:[#allocation7 + $0x50] sm:$0xff] }
  0x37   :  { %v98_v23 = vshrl.u32 %v92_v14, 15  ;;  %v97_v28 = vshrl.u32 %v91_v19, 15  ;;  %600 = vmatpush3.bf16.msra.mxu0 %v599_v25  ;;  %v154_v51 = vld [vmem:[#allocation7 + $0x58] sm:$0xff]  ;;  %v185_v52 = vld [vmem:[#allocation7 + $0x150] sm:$0xff]  ;;  %v637_v55 = vpack.c.bf16 %v202_v42, %v201_v41  ;;  %v171_v57 = vld [vmem:[#allocation7 + $0xe0] sm:$0xff]  ;;  %v56_v0 = vadd.s32 512, %v822_v2 }
  0x38   :  { %v102_v21 = vxor.u32 %v96_v13, %v90_v61  ;;  %v100_v40 = vshrl.u32 %v94_v24, 15  ;;  %v849_v44 = vxor.u32 %v95_v22, %v89_v6  ;;  %602 = vmatprep.subr.bf16.mxu0 %v601_v30  ;;  %v186_v56 = vld [vmem:[#allocation7 + $0x158] sm:$0xff]  ;;  %v172_v58 = vld [vmem:[#allocation7 + $0xe8] sm:$0xff]  ;;  %v203_v60 = vld [vmem:[#allocation7 + $0x1e0] sm:$0xff]  ;;  %v607_v1 = vpack.c.bf16 %v154_v51, %v153_v50 }
  0x39   :  { %v104_v35 = vxor.u32 %v98_v23, %v92_v14  ;;  %v851_v47 = vxor.u32 %v97_v28, %v91_v19  ;;  %632 = vmatpush3.bf16.msra.mxu1 %v631_v29  ;;  %v204_v61 = vld [vmem:[#allocation7 + $0x1e8] sm:$0xff]  ;;  %v155_v3 = vld [vmem:[#allocation7 + $0x60] sm:$0xff]  ;;  %v44_v5 = vld [vmem:[#allocation4 + $0x8] sm:$0xff]  ;;  %v639_v8 = vpack.c.bf16 %v186_v56, %v185_v52  ;;  %v609_v9 = vpack.c.bf16 %v172_v58, %v171_v57 }
  0x3a   :  { %v108_v34 = vmul.u32 2221713035, %v102_v21  ;;  %634 = vmatprep.subr.bf16.mxu1 %v633_v36  ;;  %v853_v59 = vxor.u32 %v100_v40, %v94_v24  ;;  %v107_v62 = vmul.u32 2221713035, %v849_v44  ;;  %v156_v10 = vld [vmem:[#allocation7 + $0x68] sm:$0xff]  ;;  %v187_v11 = vld [vmem:[#allocation7 + $0x160] sm:$0xff]  ;;  %v641_v14 = vpack.c.bf16 %v204_v61, %v203_v60 }
  0x3b   :  { %v110_v45 = vmul.u32 2221713035, %v104_v35  ;;  %604 = vmatpush3.bf16.msra.mxu0 %v603_v46  ;;  %v109_v6 = vmul.u32 2221713035, %v851_v47  ;;  %v188_v12 = vld [vmem:[#allocation7 + $0x168] sm:$0xff]  ;;  %v173_v15 = vld [vmem:[#allocation7 + $0xf0] sm:$0xff]  ;;  %v611_v21 = vpack.c.bf16 %v156_v10, %v155_v3  ;;  %v66_v23 = vadd.s32 %v825_v4, %v56_v0 }
  0x3c   :  { %v114_v43 = vshrl.u32 %v108_v34, 16  ;;  %606 = vmatprep.subr.bf16.mxu0 %v605_v49  ;;  %v132_v13 = vmul.f32 1.4285715, %v44_v5  ;;  %v174_v16 = vld [vmem:[#allocation7 + $0xf8] sm:$0xff]  ;;  %v46_v2 = vld [vmem:[#allocation4 + $0x18] sm:$0xff]  ;;  %v205_v18 = vld [vmem:[#allocation7 + $0x1f0] sm:$0xff]  ;;  %v643_v24 = vpack.c.bf16 %v188_v12, %v187_v11 }
  0x3d   :  { %v116_v54 = vshrl.u32 %v110_v45, 16  ;;  %636 = vmatpush3.bf16.msra.mxu1 %v635_v48  ;;  %v112_v17 = vmul.u32 2221713035, %v853_v59  ;;  %v206_v19 = vld [vmem:[#allocation7 + $0x1f8] sm:$0xff]  ;;  %v134_v20 = vmul.f32 1.4285715, %v46_v2  ;;  %v613_v25 = vpack.c.bf16 %v174_v16, %v173_v15 }
  0x3e   :  { %v120_v53 = vxor.u32 %v114_v43, %v108_v34  ;;  %638 = vmatprep.subr.bf16.mxu1 %v637_v55  ;;  %v113_v22 = vshrl.u32 %v107_v62, 16  ;;  %v157_v26 = vld [vmem:[#allocation7 + $0x70] sm:$0xff]  ;;  %v158_v27 = vld [vmem:[#allocation7 + $0x78] sm:$0xff]  ;;  %v115_v29 = vshrl.u32 %v109_v6, 16  ;;  %v645_v30 = vpack.c.bf16 %v206_v19, %v205_v18  ;;  %v223_v32 = vld [vmem:[#allocation7 + $0x280] sm:$0xff] }
  0x3f   :  { %v122_v63 = vxor.u32 %v116_v54, %v110_v45  ;;  %608 = vmatpush3.bf16.msra.mxu0 %v607_v1  ;;  %v189_v28 = vld [vmem:[#allocation7 + $0x170] sm:$0xff]  ;;  %v190_v31 = vld [vmem:[#allocation7 + $0x178] sm:$0xff]  ;;  %v224_v33 = vld [vmem:[#allocation7 + $0x288] sm:$0xff]  ;;  %v118_v34 = vshrl.u32 %v112_v17, 16  ;;  %v615_v35 = vpack.c.bf16 %v158_v27, %v157_v26  ;;  %v75_v37 = vxor.u32 %v829_v7, %v66_v23 }
  0x40   :  { %vm126_vm0 = vcmp.ge.u32.totalorder %v120_v53, 1288490188  ;;  %610 = vmatprep.subr.bf16.mxu0 %v609_v9  ;;  %v43_v36 = vld [vmem:[#allocation4] sm:$0xff]  ;;  %v119_v4 = vxor.u32 %v113_v22, %v107_v62  ;;  %v647_v38 = vpack.c.bf16 %v190_v31, %v189_v28  ;;  %v649_v39 = vpack.c.bf16 %v224_v33, %v223_v32  ;;  %v207_v40 = vld [vmem:[#allocation7 + $0x200] sm:$0xff]  ;;  %v208_v41 = vld [vmem:[#allocation7 + $0x208] sm:$0xff] }
  0x41   :  { %474 = vmatprep.mubr.msk.f32.mxu0 %vm126_vm0, %v132_v13  ;;  %vm128_vm1 = vcmp.ge.u32.totalorder %v122_v63, 1288490188  ;;  %640 = vmatpush3.bf16.msra.mxu1 %v639_v8  ;;  %v45_v42 = vld [vmem:[#allocation4 + $0x10] sm:$0xff]  ;;  %v121_v43 = vxor.u32 %v115_v29, %v109_v6  ;;  %v225_v44 = vld [vmem:[#allocation7 + $0x290] sm:$0xff]  ;;  %v226_v45 = vld [vmem:[#allocation7 + $0x298] sm:$0xff]  ;;  %v124_v46 = vxor.u32 %v118_v34, %v112_v17  ;;  %v651_v48 = vpack.c.bf16 %v208_v41, %v207_v40 }
  0x42   :  { %642 = vmatprep.subr.bf16.mxu1 %v641_v14  ;;  %476 = vmatprep.mubr.msk.f32.mxu1 %vm128_vm1, %v134_v20  ;;  %v131_v47 = vmul.f32 1.4285715, %v43_v36  ;;  %vm125_vm2 = vcmp.ge.u32.totalorder %v119_v4, 1288490188  ;;  %v133_v49 = vmul.f32 1.4285715, %v45_v42  ;;  %v653_v7 = vpack.c.bf16 %v226_v45, %v225_v44 }
  0x43   :  { %612 = vmatpush3.bf16.msra.mxu0 %v611_v21  ;;  %v81_v50 = vshrl.u32 %v75_v37, 16  ;;  %vm127_vm3 = vcmp.ge.u32.totalorder %v121_v43, 1288490188  ;;  %v209_v51 = vld [vmem:[#allocation7 + $0x210] sm:$0xff]  ;;  %v210_v52 = vld [vmem:[#allocation7 + $0x218] sm:$0xff]  ;;  %v227_v54 = vld [vmem:[#allocation7 + $0x2a0] sm:$0xff] }
  0x44   :  { %614 = vmatprep.subr.bf16.mxu0 %v613_v25  ;;  %v48_v53 = vld [vmem:[#allocation4 + $0x28] sm:$0xff]  ;;  %v228_v55 = vld [vmem:[#allocation7 + $0x2a8] sm:$0xff]  ;;  %vm130_vm4 = vcmp.ge.u32.totalorder %v124_v46, 1288490188  ;;  %v655_v57 = vpack.c.bf16 %v210_v52, %v209_v51  ;;  %v211_v60 = vld [vmem:[#allocation7 + $0x220] sm:$0xff] }
  0x45   :  { %644 = vmatpush3.bf16.msra.mxu1 %v643_v24  ;;  %v136_v56 = vmul.f32 1.4285715, %v48_v53  ;;  %v87_v58 = vxor.u32 %v81_v50, %v75_v37  ;;  %v657_v59 = vpack.c.bf16 %v228_v55, %v227_v54  ;;  %v212_v61 = vld [vmem:[#allocation7 + $0x228] sm:$0xff]  ;;  %v229_v62 = vld [vmem:[#allocation7 + $0x2b0] sm:$0xff]  ;;  %v230_v63 = vld [vmem:[#allocation7 + $0x2b8] sm:$0xff] }
  0x46   :  { %646 = vmatprep.subr.bf16.mxu1 %v645_v30  ;;  %v659_v0 = vpack.c.bf16 %v212_v61, %v211_v60  ;;  %v661_v3 = vpack.c.bf16 %v230_v63, %v229_v62  ;;  %v213_v5 = vld [vmem:[#allocation7 + $0x230] sm:$0xff]  ;;  %v214_v6 = vld [vmem:[#allocation7 + $0x238] sm:$0xff]  ;;  %v231_v8 = vld [vmem:[#allocation7 + $0x2c0] sm:$0xff] }
  0x47   :  { %616 = vmatpush3.bf16.msra.mxu0 %v615_v35  ;;  %v93_v1 = vmul.u32 2146121005, %v87_v58  ;;  %v232_v9 = vld [vmem:[#allocation7 + $0x2c8] sm:$0xff]  ;;  %v663_v10 = vpack.c.bf16 %v214_v6, %v213_v5  ;;  %v215_v13 = vld [vmem:[#allocation7 + $0x240] sm:$0xff]  ;;  %v233_v15 = vld [vmem:[#allocation7 + $0x2d0] sm:$0xff] }
  0x48   :  { %650 = vmatprep.subr.bf16.mxu0 %v649_v39  ;;  %v665_v12 = vpack.c.bf16 %v232_v9, %v231_v8  ;;  %v216_v14 = vld [vmem:[#allocation7 + $0x248] sm:$0xff]  ;;  %v234_v16 = vld [vmem:[#allocation7 + $0x2d8] sm:$0xff]  ;;  %v217_v19 = vld [vmem:[#allocation7 + $0x250] sm:$0xff] }
  0x49   :  { %648 = vmatpush3.bf16.msra.mxu1 %v647_v38  ;;  %v99_v11 = vshrl.u32 %v93_v1, 15  ;;  %v667_v2 = vpack.c.bf16 %v216_v14, %v215_v13  ;;  %v669_v18 = vpack.c.bf16 %v234_v16, %v233_v15  ;;  %v218_v20 = vld [vmem:[#allocation7 + $0x258] sm:$0xff]  ;;  %v235_v21 = vld [vmem:[#allocation7 + $0x2e0] sm:$0xff]  ;;  %v236_v22 = vld [vmem:[#allocation7 + $0x2e8] sm:$0xff] }
  0x4a   :  { %475 = vmatmul.mubr.msk.f32.vlgmr.msra.gmra.mrb[0].mxu0 %vm125_vm2, %v131_v47  ;;  %v671_v23 = vpack.c.bf16 %v218_v20, %v217_v19  ;;  %v673_v25 = vpack.c.bf16 %v236_v22, %v235_v21  ;;  %v219_v26 = vld [vmem:[#allocation7 + $0x260] sm:$0xff]  ;;  %v220_v27 = vld [vmem:[#allocation7 + $0x268] sm:$0xff]  ;;  %v237_v28 = vld [vmem:[#allocation7 + $0x2f0] sm:$0xff] }
  0x4b   :  { %652 = vmatpush3.bf16.msra.mxu0 %v651_v48  ;;  %478 = vmatprep.mubr.msk.f32.mxu0 %vm130_vm4, %v136_v56  ;;  %v105_v17 = vxor.u32 %v99_v11, %v93_v1  ;;  %v238_v29 = vld [vmem:[#allocation7 + $0x2f8] sm:$0xff]  ;;  %v675_v30 = vpack.c.bf16 %v220_v27, %v219_v26  ;;  %v221_v33 = vld [vmem:[#allocation7 + $0x270] sm:$0xff] }
  0x4c   :  { %477 = vmatmul.mubr.msk.f32.vlgmr.msra.gmra.mrb[0].mxu1 %vm127_vm3, %v133_v49  ;;  %654 = vmatprep.subr.bf16.mxu0 %v653_v7  ;;  %v677_v32 = vpack.c.bf16 %v238_v29, %v237_v28  ;;  %v222_v34 = vld [vmem:[#allocation7 + $0x278] sm:$0xff]  ;;  %v47_v36 = vld [vmem:[#allocation4 + $0x20] sm:$0xff] }
  0x4d   :  { %v111_v24 = vmul.u32 2221713035, %v105_v17  ;;  %v679_v35 = vpack.c.bf16 %v222_v34, %v221_v33  ;;  %v135_v37 = vmul.f32 1.4285715, %v47_v36  ;;  %v473_v39 = vld [vmem:[%s881_s3] ss:$0 sm:$0xff] }
  0x4f   :  { %656 = vmatpush3.bf16.msra.mxu0 %v655_v57  ;;  %v117_v31 = vshrl.u32 %v111_v24, 16 }
  0x50   :  { %658 = vmatprep.subr.bf16.mxu0 %v657_v59 }
  0x51   :  { %v123_v4 = vxor.u32 %v117_v31, %v111_v24 }
  0x53   :  { %660 = vmatpush3.bf16.msra.mxu0 %v659_v0  ;;  %vm129_vm5 = vcmp.ge.u32.totalorder %v123_v4, 1288490188 }
  0x54   :  { %662 = vmatprep.subr.bf16.mxu0 %v661_v3 }
  0x57   :  { %664 = vmatpush3.bf16.msra.mxu0 %v663_v10 }
  0x58   :  { %666 = vmatprep.subr.bf16.mxu0 %v665_v12 }
  0x5b   :  { %668 = vmatpush3.bf16.msra.mxu0 %v667_v2 }
  0x5c   :  { %670 = vmatprep.subr.bf16.mxu0 %v669_v18 }
  0x5f   :  { %672 = vmatpush3.bf16.msra.mxu0 %v671_v23 }
  0x60   :  { %674 = vmatprep.subr.bf16.mxu0 %v673_v25 }
  0x63   :  { %676 = vmatpush3.bf16.msra.mxu0 %v675_v30 }
  0x64   :  { %678 = vmatprep.subr.bf16.mxu0 %v677_v32 }
  0x67   :  { %680 = vmatpush3.bf16.msra.mxu0 %v679_v35 }
  0x6a   :  { %479 = vmatmul.mubr.msk.f32.vlgmr.msra.gmra.mrb[2].mxu0 %vm129_vm5, %v135_v37 }
 0x11d   :  { %v512_v38 = vpop.f32.mrb[0].mxu0 }
 0x11e   :  { %v513_v40 = vpop.f32.mrb[1].mxu0 }
 0x11f   :  { %v547_v41 = vpop.f32.mrb[0].mxu1  ;;  %v514_v42 = vadd.f32 %v513_v40, %v512_v38 }
 0x120   :  { %v548_v43 = vpop.f32.mrb[1].mxu1 }
 0x121   :  { %v549_v44 = vadd.f32 %v548_v43, %v547_v41  ;;  %v313_v45 = vadd.f32 %v514_v42, %v473_v39 }
 0x123   :  { %v383_v46 = vadd.f32 %v549_v44, %v313_v45 }
 0x13d   :  { %v582_v47 = vpop.f32.mrb[2].mxu0 }
 0x13e   :  { %v583_v48 = vpop.f32.mrb[3].mxu0 }
 0x13f   :  { %v584_v49 = vadd.f32 %v583_v48, %v582_v47 }
 0x141   :  { %v453_v50 = vadd.f32 %v584_v49, %v383_v46 }
 0x143   :  { %456 = vst [vmem:[#allocation9] sm:$0xff] %v453_v50 }
 0x144   :  { %741 = shalt.err (!%p738_p6)
}
 0x145   :  { %s742_s21 = scalar_lea.hbm %s882_s4, 128 }
 0x146   :  { %p743_p7 = scmp.ne.s32.totalorder %s882_s4, %s742_s21  ;;  %p746_p8 = scmp.lt.u32.totalorder %s742_s21, %s882_s4 }
 0x148   :  { %p748_p9 = pnand %p746_p8, %p743_p7 }
 0x14a   :  { %751 = shalt.err (!%p748_p9)
}
 0x14b   :  { %466 = dma.vmem_to_hbm [thread:$0]  %s464_s18, 128, %s882_s4, [#allocation6]  }
 0x14c   :  { %756 = dma.done.wait [#allocation6], 128  }
 0x14d   :  { %757 = vsyncadd [#allocation6], 4294967168 }
 0x14e   :  { %470 = vsyncpa [#allocation5], 1 }
 0x14f   :  { %471 = vsyncpa [#allocation8], 1 }
 0x150   :  { %472 = vsyncpa [#allocation6], 1 }

</bundles_post_ra>
